<compile_context>
chip_gen: v5e
topology: v5e:2x2
jax: 0.10.0
libtpu: 0.0.40
codegen_flags: <defaults>
</compile_context>

<pallas_src>
import functools

import jax
import jax.numpy as jnp
from jax.experimental import pallas as pl
from jax.experimental.pallas import tpu as pltpu

# ---------------------------------------------------------------------------
# Model dimensions (consistent with the module's __init__), plus TPU padding
# ---------------------------------------------------------------------------
OUTPUT_DIM = 64     # vocab size
EMB_DIM    = 16
HID_DIM    = 32     # 4 * HID_DIM == 128 -> one full lane width of gates
N_LAYERS   = 2
BATCH      = 4

B_PAD = 8                     # pad batch to the 8-sublane vreg height
V_PAD = 128                   # pad fc_out vocab dim to a full lane width

_VMEM = pl.BlockSpec(memory_space=pltpu.MemorySpace.VMEM)


# ---------------------------------------------------------------------------
# Fused decode-step kernel
# ---------------------------------------------------------------------------
def _decoder_step_kernel(tok_ref, emb_ref, h_ref, c_ref, w_ref, b_ref,
                         wfc_ref, bfc_ref,
                         pred_ref, h_out_ref, c_out_ref):
    """Fused one-hot embedding gather + N_LAYERS LSTM cells + fc_out.

    tok_ref  : VMEM [B_PAD, 1]            int32 token ids (pad rows = 0)
    emb_ref  : VMEM [V, H]                bf16 embedding table (cols E..H zero)
    h_ref    : VMEM [L, B_PAD, H]         f32 hidden state (aliased to h_out)
    c_ref    : VMEM [L, B_PAD, H]         f32 cell state   (aliased to c_out)
    w_ref    : VMEM [L, 2H, 4H]           bf16 fused [wx; wh] (gate order i,f,g,o)
    b_ref    : VMEM [L, 1, 4H]            f32 (b_ih + b_hh)
    wfc_ref  : VMEM [H, V_PAD]            bf16 fc_out weight (zero-padded cols)
    bfc_ref  : VMEM [1, V_PAD]            f32 fc_out bias
    pred_ref : VMEM [B_PAD, V_PAD]        f32 logits
    h_out/c_out : VMEM [L, B_PAD, H]      f32 new state
    """
    H = HID_DIM

    # ---- embedding gather as a one-hot MXU dot (dropout == identity) -------
    tok = tok_ref[...]                                           # [B_PAD, 1] i32
    vocab = jax.lax.broadcasted_iota(jnp.int32, (B_PAD, OUTPUT_DIM), 1)
    onehot = (vocab == tok).astype(jnp.bfloat16)                 # [B_PAD, V]
    x = jnp.dot(onehot, emb_ref[...],
                preferred_element_type=jnp.float32)              # f32 [B_PAD, H]

    # lane mask selecting the g-gate (tanh) lanes 2H..3H of the 4H tile
    lane = jax.lax.broadcasted_iota(jnp.int32, (B_PAD, 4 * H), 1)
    g_lane = (lane >= 2 * H) & (lane < 3 * H)

    for layer in range(N_LAYERS):                                # static, unrolled
        h = h_ref[layer]                                         # f32 [B_PAD, H]
        c = c_ref[layer]

        # single fused [B_PAD, 2H] x [2H, 4H] gate pre-activation: 1 MXU issue
        xh = jnp.concatenate([x.astype(jnp.bfloat16),
                              h.astype(jnp.bfloat16)], axis=-1)  # [B_PAD, 2H]
        gates = (jnp.dot(xh, w_ref[layer],
                         preferred_element_type=jnp.float32)
                 + b_ref[layer])                                 # f32 [B_PAD, 4H]

        # one EUP tanh pass for the whole tile; sigmoid(z) = 0.5*(tanh(z/2)+1)
        t = jnp.tanh(jnp.where(g_lane, gates, 0.5 * gates))
        act = jnp.where(g_lane, t, 0.5 * t + 0.5)

        i_g = act[:, 0 * H:1 * H]
        f_g = act[:, 1 * H:2 * H]
        g_g = act[:, 2 * H:3 * H]
        o_g = act[:, 3 * H:4 * H]

        c_new = f_g * c + i_g * g_g
        h_new = o_g * jnp.tanh(c_new)

        h_out_ref[layer] = h_new
        c_out_ref[layer] = c_new
        x = h_new                                                # inter-layer dropout = id

    # fc_out on the top-layer hidden state, lane-dense padded output
    pred_ref[...] = (jnp.dot(x.astype(jnp.bfloat16), wfc_ref[...],
                             preferred_element_type=jnp.float32)
                     + bfc_ref[...])


# ---------------------------------------------------------------------------
# Step wrapper: caller carries padded state; h/c buffers are donated + aliased
# ---------------------------------------------------------------------------
@functools.partial(jax.jit, donate_argnums=(1, 2))
def decoder_step(tok_pad, h_pad, c_pad, params):
    """tok_pad: [B_PAD,1] int32; h_pad/c_pad: [N_LAYERS, B_PAD, HID_DIM] f32.

    Returns (pred_pad [B_PAD, V_PAD], h_pad_new, c_pad_new) -- all padded,
    ready to be fed straight back into the next step (no per-step pad/slice).
    """
    return pl.pallas_call(
        _decoder_step_kernel,
        out_shape=(jax.ShapeDtypeStruct((B_PAD, V_PAD), jnp.float32),
                   jax.ShapeDtypeStruct((N_LAYERS, B_PAD, HID_DIM), jnp.float32),
                   jax.ShapeDtypeStruct((N_LAYERS, B_PAD, HID_DIM), jnp.float32)),
        in_specs=[_VMEM] * 8,
        out_specs=(_VMEM, _VMEM, _VMEM),
        # keep hidden/cell state in-place (real HBM buffer reuse across steps,
        # now that the caller carries padded state and the jit donates it)
        input_output_aliases={2: 1, 3: 2},
    )(tok_pad, params["emb"], h_pad, c_pad,
      params["w"], params["b"], params["w_fc"], params["b_fc"])


def pad_tokens(tokens):
    tok = jnp.zeros((B_PAD,), jnp.int32).at[:tokens.shape[0]].set(
        tokens.astype(jnp.int32))
    return tok.reshape(B_PAD, 1)


def pad_state(hidden, cell):
    b = hidden.shape[1]
    h_pad = jnp.zeros((N_LAYERS, B_PAD, HID_DIM), jnp.float32).at[:, :b].set(hidden)
    c_pad = jnp.zeros((N_LAYERS, B_PAD, HID_DIM), jnp.float32).at[:, :b].set(cell)
    return h_pad, c_pad


# ---------------------------------------------------------------------------
# Parameter construction in PyTorch layout, plus packing for the kernel
# ---------------------------------------------------------------------------
def make_pt_params(key):
    """PyTorch-layout parameters (gate order i, f, g, o)."""
    keys = jax.random.split(key, 2 + N_LAYERS)
    scale = HID_DIM ** -0.5

    emb = jax.random.normal(keys[0], (OUTPUT_DIM, EMB_DIM), jnp.float32)

    w_ih, w_hh, b_ih, b_hh = [], [], [], []
    for layer in range(N_LAYERS):
        in_dim = EMB_DIM if layer == 0 else HID_DIM
        k0, k1, k2, k3 = jax.random.split(keys[1 + layer], 4)
        w_ih.append(jax.random.uniform(k0, (4 * HID_DIM, in_dim), jnp.float32, -scale, scale))
        w_hh.append(jax.random.uniform(k1, (4 * HID_DIM, HID_DIM), jnp.float32, -scale, scale))
        b_ih.append(jax.random.uniform(k2, (4 * HID_DIM,), jnp.float32, -scale, scale))
        b_hh.append(jax.random.uniform(k3, (4 * HID_DIM,), jnp.float32, -scale, scale))

    kf0, kf1 = jax.random.split(keys[1 + N_LAYERS], 2)
    w_fc = jax.random.uniform(kf0, (OUTPUT_DIM, HID_DIM), jnp.float32, -scale, scale)
    b_fc = jax.random.uniform(kf1, (OUTPUT_DIM,), jnp.float32, -scale, scale)

    return {"emb": emb, "w_ih": w_ih, "w_hh": w_hh, "b_ih": b_ih, "b_hh": b_hh,
            "w_fc": w_fc, "b_fc": b_fc}


def pack_params(pt):
    """Repack PyTorch-layout params into the fused kernel layout."""
    assert EMB_DIM <= HID_DIM
    # embedding padded to H feature columns so layer-0 input is [B, H]
    emb = jnp.pad(pt["emb"], ((0, 0), (0, HID_DIM - EMB_DIM)))      # [V, H]

    w, b = [], []
    for layer in range(N_LAYERS):
        wx = pt["w_ih"][layer].T                                    # [in_dim, 4H]
        in_dim = wx.shape[0]
        if in_dim < HID_DIM:                                        # pad layer-0 input dim
            wx = jnp.pad(wx, ((0, HID_DIM - in_dim), (0, 0)))
        wh = pt["w_hh"][layer].T                                    # [H, 4H]
        w.append(jnp.concatenate([wx, wh], axis=0))                 # [2H, 4H]
        b.append((pt["b_ih"][layer] + pt["b_hh"][layer]).reshape(1, 4 * HID_DIM))

    w_fc = jnp.pad(pt["w_fc"].T, ((0, 0), (0, V_PAD - OUTPUT_DIM)))  # [H, V_PAD]
    b_fc = jnp.pad(pt["b_fc"], (0, V_PAD - OUTPUT_DIM)).reshape(1, V_PAD)

    return {
        "emb":  emb.astype(jnp.bfloat16),                           # [V, H]
        "w":    jnp.stack(w, 0).astype(jnp.bfloat16),               # [L, 2H, 4H]
        "b":    jnp.stack(b, 0).astype(jnp.float32),                # [L, 1, 4H]
        "w_fc": w_fc.astype(jnp.bfloat16),                          # [H, V_PAD]
        "b_fc": b_fc.astype(jnp.float32),                           # [1, V_PAD]
    }


# ---------------------------------------------------------------------------
# Pure-JAX reference from PyTorch-layout params (same bf16 matmul precision)
# ---------------------------------------------------------------------------
def decoder_reference(tokens, hidden, cell, pt):
    H = HID_DIM
    x = jnp.take(pt["emb"], tokens, axis=0)              # [B, E]
    new_h, new_c = [], []
    for layer in range(N_LAYERS):
        w_ih = pt["w_ih"][layer].astype(jnp.bfloat16)    # [4H, in]
        w_hh = pt["w_hh"][layer].astype(jnp.bfloat16)    # [4H, H]
        bias = pt["b_ih"][layer] + pt["b_hh"][layer]     # [4H]
        h, c = hidden[layer], cell[layer]
        gates = (jnp.dot(x.astype(jnp.bfloat16), w_ih.T, preferred_element_type=jnp.float32)
                 + jnp.dot(h.astype(jnp.bfloat16), w_hh.T, preferred_element_type=jnp.float32)
                 + bias)
        i = jax.nn.sigmoid(gates[:, 0 * H:1 * H])
        f = jax.nn.sigmoid(gates[:, 1 * H:2 * H])
        g = jnp.tanh(gates[:, 2 * H:3 * H])
        o = jax.nn.sigmoid(gates[:, 3 * H:4 * H])
        c_new = f * c + i * g
        h_new = o * jnp.tanh(c_new)
        new_h.append(h_new)
        new_c.append(c_new)
        x = h_new
    pred = (jnp.dot(x.astype(jnp.bfloat16), pt["w_fc"].astype(jnp.bfloat16).T,
                    preferred_element_type=jnp.float32) + pt["b_fc"])
    return pred, jnp.stack(new_h, 0), jnp.stack(new_c, 0)


if __name__ == "__main__":
    pt_params = make_pt_params(jax.random.PRNGKey(42))
    params = pack_params(pt_params)

    key = jax.random.PRNGKey(0)
    k_tok, k_h, k_c = jax.random.split(key, 3)
    tokens = jax.random.randint(k_tok, (BATCH,), 0, OUTPUT_DIM, dtype=jnp.int32)
    hidden = jax.random.normal(k_h, (N_LAYERS, BATCH, HID_DIM), jnp.float32)
    cell = jax.random.normal(k_c, (N_LAYERS, BATCH, HID_DIM), jnp.float32)

    # Pad ONCE; padded state is carried across steps (no per-step pad/slice).
    N_STEPS = 3
    tok_pad = pad_tokens(tokens)
    h_pad, c_pad = pad_state(hidden, cell)

    preds = []
    for _ in range(N_STEPS):
        pred_pad, h_pad, c_pad = decoder_step(tok_pad, h_pad, c_pad, params)
        preds.append(pred_pad[:BATCH, :OUTPUT_DIM])
    jax.block_until_ready((preds, h_pad, c_pad))

    # Reference follows the same N_STEPS, feeding state back.
    h_exp, c_exp = hidden, cell
    for step in range(N_STEPS):
        pred_exp, h_exp, c_exp = decoder_reference(tokens, h_exp, c_exp, pt_params)
        assert preds[step].shape == (BATCH, OUTPUT_DIM)
        assert jnp.allclose(preds[step], pred_exp, atol=2e-3, rtol=2e-3), \
            f"prediction mismatch at step {step}"

    h_out = h_pad[:, :BATCH]
    c_out = c_pad[:, :BATCH]
    assert h_out.shape == (N_LAYERS, BATCH, HID_DIM)
    assert c_out.shape == (N_LAYERS, BATCH, HID_DIM)
    assert jnp.allclose(h_out, h_exp, atol=2e-3, rtol=2e-3), "hidden mismatch"
    assert jnp.allclose(c_out, c_exp, atol=2e-3, rtol=2e-3), "cell mismatch"

    print("KERNEL_OK")
</pallas_src>

<mosaic_0001>
module attributes {stable_mosaic.version = 11 : i64} {
  func.func @_decoder_step_kernel(%arg0: memref<8x1xi32, #tpu.memory_space<vmem>>, %arg1: memref<64x32xbf16, #tpu.memory_space<vmem>>, %arg2: memref<2x8x32xf32, #tpu.memory_space<vmem>>, %arg3: memref<2x8x32xf32, #tpu.memory_space<vmem>>, %arg4: memref<2x64x128xbf16, #tpu.memory_space<vmem>>, %arg5: memref<2x1x128xf32, #tpu.memory_space<vmem>>, %arg6: memref<32x128xbf16, #tpu.memory_space<vmem>>, %arg7: memref<1x128xf32, #tpu.memory_space<vmem>>, %arg8: memref<8x128xf32, #tpu.memory_space<vmem>>, %arg9: memref<2x8x32xf32, #tpu.memory_space<vmem>>, %arg10: memref<2x8x32xf32, #tpu.memory_space<vmem>>) attributes {dimension_semantics = [], scalar_prefetch = 0 : i64, scratch_operands = 0 : i64, tpu.core_type = #tpu.core_type<tc>} {
    %c0 = arith.constant 0 : index
    %c0_0 = arith.constant 0 : index
    %0 = vector.load %arg0[%c0, %c0_0] : memref<8x1xi32, #tpu.memory_space<vmem>>, vector<8x1xi32>
    %1 = tpu.iota {dimensions = array<i32: 1>} : vector<8x64xi32>
    %2 = vector.broadcast %0 : vector<8x1xi32> to vector<8x64xi32>
    %3 = arith.cmpi eq, %1, %2 : vector<8x64xi32>
    %4 = arith.extui %3 : vector<8x64xi1> to vector<8x64xi32>
    %5 = arith.sitofp %4 : vector<8x64xi32> to vector<8x64xf32>
    %6 = arith.truncf %5 : vector<8x64xf32> to vector<8x64xbf16>
    %c0_1 = arith.constant 0 : index
    %c0_2 = arith.constant 0 : index
    %7 = vector.load %arg1[%c0_1, %c0_2] : memref<64x32xbf16, #tpu.memory_space<vmem>>, vector<64x32xbf16>
    %cst = arith.constant dense<0.000000e+00> : vector<8x32xf32>
    %8 = tpu.matmul %6, %7, %cst {dimension_numbers = #tpu.dot_dimension_numbers<[1], [0], [0], [1], [0, 0, 1, 1], [], []>} : vector<8x64xbf16>, vector<64x32xbf16>, vector<8x32xf32> -> vector<8x32xf32>
    %9 = tpu.iota {dimensions = array<i32: 1>} : vector<8x128xi32>
    %c64_i32 = arith.constant 64 : i32
    %10 = vector.broadcast %c64_i32 : i32 to vector<8x128xi32>
    %11 = arith.cmpi sge, %9, %10 : vector<8x128xi32>
    %c96_i32 = arith.constant 96 : i32
    %12 = vector.broadcast %c96_i32 : i32 to vector<8x128xi32>
    %13 = arith.cmpi slt, %9, %12 : vector<8x128xi32>
    %14 = arith.andi %11, %13 : vector<8x128xi1>
    %c0_3 = arith.constant 0 : index
    %c0_4 = arith.constant 0 : index
    %c0_5 = arith.constant 0 : index
    %15 = vector.load %arg2[%c0_3, %c0_4, %c0_5] : memref<2x8x32xf32, #tpu.memory_space<vmem>>, vector<1x8x32xf32>
    %16 = vector.shape_cast %15 : vector<1x8x32xf32> to vector<8x32xf32>
    %c0_6 = arith.constant 0 : index
    %c0_7 = arith.constant 0 : index
    %c0_8 = arith.constant 0 : index
    %17 = vector.load %arg3[%c0_6, %c0_7, %c0_8] : memref<2x8x32xf32, #tpu.memory_space<vmem>>, vector<1x8x32xf32>
    %18 = vector.shape_cast %17 : vector<1x8x32xf32> to vector<8x32xf32>
    %19 = arith.truncf %8 : vector<8x32xf32> to vector<8x32xbf16>
    %20 = arith.truncf %16 : vector<8x32xf32> to vector<8x32xbf16>
    %21 = tpu.concatenate %19, %20 in 1 : vector<8x32xbf16>, vector<8x32xbf16> -> vector<8x64xbf16>
    %c0_9 = arith.constant 0 : index
    %c0_10 = arith.constant 0 : index
    %c0_11 = arith.constant 0 : index
    %22 = vector.load %arg4[%c0_9, %c0_10, %c0_11] : memref<2x64x128xbf16, #tpu.memory_space<vmem>>, vector<1x64x128xbf16>
    %23 = vector.shape_cast %22 : vector<1x64x128xbf16> to vector<64x128xbf16>
    %cst_12 = arith.constant dense<0.000000e+00> : vector<8x128xf32>
    %24 = tpu.matmul %21, %23, %cst_12 {dimension_numbers = #tpu.dot_dimension_numbers<[1], [0], [0], [1], [0, 0, 1, 1], [], []>} : vector<8x64xbf16>, vector<64x128xbf16>, vector<8x128xf32> -> vector<8x128xf32>
    %c0_13 = arith.constant 0 : index
    %c0_14 = arith.constant 0 : index
    %c0_15 = arith.constant 0 : index
    %25 = vector.load %arg5[%c0_13, %c0_14, %c0_15] : memref<2x1x128xf32, #tpu.memory_space<vmem>>, vector<1x1x128xf32>
    %26 = vector.shape_cast %25 : vector<1x1x128xf32> to vector<1x128xf32>
    %27 = vector.broadcast %26 : vector<1x128xf32> to vector<8x128xf32>
    %28 = arith.addf %24, %27 : vector<8x128xf32>
    %cst_16 = arith.constant 5.000000e-01 : f32
    %29 = vector.broadcast %cst_16 : f32 to vector<8x128xf32>
    %30 = arith.mulf %29, %28 : vector<8x128xf32>
    %31 = arith.select %14, %28, %30 : vector<8x128xi1>, vector<8x128xf32>
    %32 = math.tanh %31 : vector<8x128xf32>
    %cst_17 = arith.constant 5.000000e-01 : f32
    %33 = vector.broadcast %cst_17 : f32 to vector<8x128xf32>
    %34 = arith.mulf %33, %32 : vector<8x128xf32>
    %cst_18 = arith.constant 5.000000e-01 : f32
    %35 = vector.broadcast %cst_18 : f32 to vector<8x128xf32>
    %36 = arith.addf %34, %35 : vector<8x128xf32>
    %37 = arith.select %14, %32, %36 : vector<8x128xi1>, vector<8x128xf32>
    %38 = vector.extract_strided_slice %37 {offsets = [0, 0], sizes = [8, 32], strides = [1, 1]} : vector<8x128xf32> to vector<8x32xf32>
    %39 = vector.extract_strided_slice %37 {offsets = [0, 32], sizes = [8, 32], strides = [1, 1]} : vector<8x128xf32> to vector<8x32xf32>
    %40 = vector.extract_strided_slice %37 {offsets = [0, 64], sizes = [8, 32], strides = [1, 1]} : vector<8x128xf32> to vector<8x32xf32>
    %41 = vector.extract_strided_slice %37 {offsets = [0, 96], sizes = [8, 32], strides = [1, 1]} : vector<8x128xf32> to vector<8x32xf32>
    %42 = arith.mulf %39, %18 : vector<8x32xf32>
    %43 = arith.mulf %38, %40 : vector<8x32xf32>
    %44 = arith.addf %42, %43 : vector<8x32xf32>
    %45 = math.tanh %44 : vector<8x32xf32>
    %46 = arith.mulf %41, %45 : vector<8x32xf32>
    %c0_19 = arith.constant 0 : index
    %c0_20 = arith.constant 0 : index
    %c0_21 = arith.constant 0 : index
    %47 = vector.load %arg9[%c0_19, %c0_20, %c0_21] : memref<2x8x32xf32, #tpu.memory_space<vmem>>, vector<1x8x32xf32>
    %48 = vector.shape_cast %47 : vector<1x8x32xf32> to vector<8x32xf32>
    %49 = vector.shape_cast %46 : vector<8x32xf32> to vector<1x8x32xf32>
    tpu.vector_store %arg9[%c0_19, %c0_20, %c0_21], %49 {strides = array<i32>} : memref<2x8x32xf32, #tpu.memory_space<vmem>>, vector<1x8x32xf32>,
    %c0_22 = arith.constant 0 : index
    %c0_23 = arith.constant 0 : index
    %c0_24 = arith.constant 0 : index
    %50 = vector.load %arg10[%c0_22, %c0_23, %c0_24] : memref<2x8x32xf32, #tpu.memory_space<vmem>>, vector<1x8x32xf32>
    %51 = vector.shape_cast %50 : vector<1x8x32xf32> to vector<8x32xf32>
    %52 = vector.shape_cast %44 : vector<8x32xf32> to vector<1x8x32xf32>
    tpu.vector_store %arg10[%c0_22, %c0_23, %c0_24], %52 {strides = array<i32>} : memref<2x8x32xf32, #tpu.memory_space<vmem>>, vector<1x8x32xf32>,
    %c1 = arith.constant 1 : index
    %c0_25 = arith.constant 0 : index
    %c0_26 = arith.constant 0 : index
    %53 = vector.load %arg2[%c1, %c0_25, %c0_26] : memref<2x8x32xf32, #tpu.memory_space<vmem>>, vector<1x8x32xf32>
    %54 = vector.shape_cast %53 : vector<1x8x32xf32> to vector<8x32xf32>
    %c1_27 = arith.constant 1 : index
    %c0_28 = arith.constant 0 : index
    %c0_29 = arith.constant 0 : index
    %55 = vector.load %arg3[%c1_27, %c0_28, %c0_29] : memref<2x8x32xf32, #tpu.memory_space<vmem>>, vector<1x8x32xf32>
    %56 = vector.shape_cast %55 : vector<1x8x32xf32> to vector<8x32xf32>
    %57 = arith.truncf %46 : vector<8x32xf32> to vector<8x32xbf16>
    %58 = arith.truncf %54 : vector<8x32xf32> to vector<8x32xbf16>
    %59 = tpu.concatenate %57, %58 in 1 : vector<8x32xbf16>, vector<8x32xbf16> -> vector<8x64xbf16>
    %c1_30 = arith.constant 1 : index
    %c0_31 = arith.constant 0 : index
    %c0_32 = arith.constant 0 : index
    %60 = vector.load %arg4[%c1_30, %c0_31, %c0_32] : memref<2x64x128xbf16, #tpu.memory_space<vmem>>, vector<1x64x128xbf16>
    %61 = vector.shape_cast %60 : vector<1x64x128xbf16> to vector<64x128xbf16>
    %cst_33 = arith.constant dense<0.000000e+00> : vector<8x128xf32>
    %62 = tpu.matmul %59, %61, %cst_33 {dimension_numbers = #tpu.dot_dimension_numbers<[1], [0], [0], [1], [0, 0, 1, 1], [], []>} : vector<8x64xbf16>, vector<64x128xbf16>, vector<8x128xf32> -> vector<8x128xf32>
    %c1_34 = arith.constant 1 : index
    %c0_35 = arith.constant 0 : index
    %c0_36 = arith.constant 0 : index
    %63 = vector.load %arg5[%c1_34, %c0_35, %c0_36] : memref<2x1x128xf32, #tpu.memory_space<vmem>>, vector<1x1x128xf32>
    %64 = vector.shape_cast %63 : vector<1x1x128xf32> to vector<1x128xf32>
    %65 = vector.broadcast %64 : vector<1x128xf32> to vector<8x128xf32>
    %66 = arith.addf %62, %65 : vector<8x128xf32>
    %cst_37 = arith.constant 5.000000e-01 : f32
    %67 = vector.broadcast %cst_37 : f32 to vector<8x128xf32>
    %68 = arith.mulf %67, %66 : vector<8x128xf32>
    %69 = arith.select %14, %66, %68 : vector<8x128xi1>, vector<8x128xf32>
    %70 = math.tanh %69 : vector<8x128xf32>
    %cst_38 = arith.constant 5.000000e-01 : f32
    %71 = vector.broadcast %cst_38 : f32 to vector<8x128xf32>
    %72 = arith.mulf %71, %70 : vector<8x128xf32>
    %cst_39 = arith.constant 5.000000e-01 : f32
    %73 = vector.broadcast %cst_39 : f32 to vector<8x128xf32>
    %74 = arith.addf %72, %73 : vector<8x128xf32>
    %75 = arith.select %14, %70, %74 : vector<8x128xi1>, vector<8x128xf32>
    %76 = vector.extract_strided_slice %75 {offsets = [0, 0], sizes = [8, 32], strides = [1, 1]} : vector<8x128xf32> to vector<8x32xf32>
    %77 = vector.extract_strided_slice %75 {offsets = [0, 32], sizes = [8, 32], strides = [1, 1]} : vector<8x128xf32> to vector<8x32xf32>
    %78 = vector.extract_strided_slice %75 {offsets = [0, 64], sizes = [8, 32], strides = [1, 1]} : vector<8x128xf32> to vector<8x32xf32>
    %79 = vector.extract_strided_slice %75 {offsets = [0, 96], sizes = [8, 32], strides = [1, 1]} : vector<8x128xf32> to vector<8x32xf32>
    %80 = arith.mulf %77, %56 : vector<8x32xf32>
    %81 = arith.mulf %76, %78 : vector<8x32xf32>
    %82 = arith.addf %80, %81 : vector<8x32xf32>
    %83 = math.tanh %82 : vector<8x32xf32>
    %84 = arith.mulf %79, %83 : vector<8x32xf32>
    %c1_40 = arith.constant 1 : index
    %c0_41 = arith.constant 0 : index
    %c0_42 = arith.constant 0 : index
    %85 = vector.load %arg9[%c1_40, %c0_41, %c0_42] : memref<2x8x32xf32, #tpu.memory_space<vmem>>, vector<1x8x32xf32>
    %86 = vector.shape_cast %85 : vector<1x8x32xf32> to vector<8x32xf32>
    %87 = vector.shape_cast %84 : vector<8x32xf32> to vector<1x8x32xf32>
    tpu.vector_store %arg9[%c1_40, %c0_41, %c0_42], %87 {strides = array<i32>} : memref<2x8x32xf32, #tpu.memory_space<vmem>>, vector<1x8x32xf32>,
    %c1_43 = arith.constant 1 : index
    %c0_44 = arith.constant 0 : index
    %c0_45 = arith.constant 0 : index
    %88 = vector.load %arg10[%c1_43, %c0_44, %c0_45] : memref<2x8x32xf32, #tpu.memory_space<vmem>>, vector<1x8x32xf32>
    %89 = vector.shape_cast %88 : vector<1x8x32xf32> to vector<8x32xf32>
    %90 = vector.shape_cast %82 : vector<8x32xf32> to vector<1x8x32xf32>
    tpu.vector_store %arg10[%c1_43, %c0_44, %c0_45], %90 {strides = array<i32>} : memref<2x8x32xf32, #tpu.memory_space<vmem>>, vector<1x8x32xf32>,
    %91 = arith.truncf %84 : vector<8x32xf32> to vector<8x32xbf16>
    %c0_46 = arith.constant 0 : index
    %c0_47 = arith.constant 0 : index
    %92 = vector.load %arg6[%c0_46, %c0_47] : memref<32x128xbf16, #tpu.memory_space<vmem>>, vector<32x128xbf16>
    %cst_48 = arith.constant dense<0.000000e+00> : vector<8x128xf32>
    %93 = tpu.matmul %91, %92, %cst_48 {dimension_numbers = #tpu.dot_dimension_numbers<[1], [0], [0], [1], [0, 0, 1, 1], [], []>} : vector<8x32xbf16>, vector<32x128xbf16>, vector<8x128xf32> -> vector<8x128xf32>
    %c0_49 = arith.constant 0 : index
    %c0_50 = arith.constant 0 : index
    %94 = vector.load %arg7[%c0_49, %c0_50] : memref<1x128xf32, #tpu.memory_space<vmem>>, vector<1x128xf32>
    %95 = vector.broadcast %94 : vector<1x128xf32> to vector<8x128xf32>
    %96 = arith.addf %93, %95 : vector<8x128xf32>
    %c0_51 = arith.constant 0 : index
    %c0_52 = arith.constant 0 : index
    %97 = vector.load %arg8[%c0_51, %c0_52] : memref<8x128xf32, #tpu.memory_space<vmem>>, vector<8x128xf32>
    tpu.vector_store %arg8[%c0_51, %c0_52], %96 {strides = array<i32>} : memref<8x128xf32, #tpu.memory_space<vmem>>, vector<8x128xf32>,
    return
  }
}

</mosaic_0001>

<bundles_post_ra>
// kernel: decoder_step.1
= control target key start
LH: loop header
LB: loop body
LE: loop exit
PB: predicated region body
PF: predicated region fallthrough
CT: control target
= control target key end

     0   :  { %16 = vsyncpa [#allocation3], 0  ;;  %s871_s0 = inlined_call_operand.vmem [shape: s32[8,1], index: 0, kind: input, shape index: {}]   ;;  %s872_s1 = inlined_call_operand.vmem [shape: bf16[64,32], index: 1, kind: input, shape index: {}]   ;;  %s873_s2 = inlined_call_operand.hbm [shape: f32[2,8,32], index: 2, kind: input, shape index: {}, may-alias: {2,9}]   ;;  %s874_s3 = inlined_call_operand.hbm [shape: f32[2,8,32], index: 3, kind: input, shape index: {}, may-alias: {3,10}]   ;;  %s875_s4 = inlined_call_operand.hbm [shape: bf16[2,64,128], index: 4, kind: input, shape index: {}]   ;;  %s876_s5 = inlined_call_operand.vmem [shape: f32[2,1,128], index: 5, kind: input, shape index: {}]   ;;  %s877_s6 = inlined_call_operand.vmem [shape: bf16[32,128], index: 6, kind: input, shape index: {}]   ;;  %s878_s7 = inlined_call_operand.vmem [shape: f32[1,128], index: 7, kind: input, shape index: {}]   ;;  %s879_s8 = inlined_call_operand.hbm [shape: f32[8,128], index: 8, kind: output, shape index: {0}]   ;;  %s880_s9 = inlined_call_operand.hbm [shape: f32[2,8,32], index: 9, kind: output, shape index: {1}, may-alias: {2,9}]   ;;  %s881_s10 = inlined_call_operand.hbm [shape: f32[2,8,32], index: 10, kind: output, shape index: {2}, may-alias: {3,10}]  }
   0x1   :  { %17 = vsyncpa [#allocation6], 0 }
   0x2   :  { %18 = vsyncpa [#allocation4], 0 }
   0x3   :  { %19 = vsyncpa [#allocation10], 0  ;;  %s41_s15 = sshll.u32 %s874_s3, 4  ;;  %s704_s16 = smov [#allocation5]   ;;  %s42_s15 = int_to_ptr.hbm [resolvable:$true] %s41_s15 }
   0x4   :  { %s43_s17 = sshll.u32 %s704_s16, 4  ;;  %s28_s20 = sshll.u32 %s873_s2, 4  ;;  %s44_s17 = int_to_ptr.vmem [resolvable:$true] %s43_s17  ;;  %s29_s20 = int_to_ptr.hbm [resolvable:$true] %s28_s20 }
   0x5   :  { %s705_s21 = smov 128   ;;  %s706_s22 = smov 8  }
   0x6   :  { %49 = dma.hbm_to_vmem [thread:$0]  %s42_s15, 256, %s44_s17, [#allocation6], %s705_s21, %s705_s21, %s706_s22  }
   0x7   :  { %s707_s23 = smov [#allocation2]   ;;  %s54_s3 = sshll.u32 %s875_s4, 4  ;;  %s55_s3 = int_to_ptr.hbm [resolvable:$true] %s54_s3 }
   0x8   :  { %s30_s24 = sshll.u32 %s707_s23, 4  ;;  %s708_s2 = smov [#allocation7]   ;;  %s31_s24 = int_to_ptr.vmem [resolvable:$true] %s30_s24 }
   0x9   :  { %36 = dma.hbm_to_vmem [thread:$0]  %s29_s20, 256, %s31_s24, [#allocation3], %s705_s21, %s705_s21, %s706_s22  }
   0xa   :  { %s56_s27 = sshll.u32 %s708_s2, 4  ;;  %s709_s28 = smov 64   ;;  %s57_s27 = int_to_ptr.vmem [resolvable:$true] %s56_s27 }
   0xb   :  { %s710_s29 = smov 4  }
   0xc   :  { %62 = dma.hbm_to_vmem [thread:$0]  %s55_s3, 1024, %s57_s27, [#allocation6], %s709_s28, %s709_s28, %s710_s29  }
   0xd   :  { %696 = dma.done.wait [#allocation3], 256  }
   0xe   :  { %697 = vsyncadd [#allocation3], 4294967040 }
   0xf   :  { %698 = dma.done.wait [#allocation6], 1280  }
  0x10   :  { %699 = vsyncadd [#allocation6], 4294966016  ;;  %v711_v0 = vmov 0   ;;  %v82_v1 = vld [vmem:[%s871_s0] sm:$0xff]  ;;  %v515_v2 = vld [vmem:[%s872_s1 + $0x18] sm:$0xff]  ;;  %s712_s0 = smov 32   ;;  %v83_v13 = vlaneseq }
  0x11   :  { %540 = vset.pattern.permute.xlu0 %v711_v0  ;;  %132 = vmatpush.bf16.msra.mxu0 %v515_v2  ;;  %v514_v3 = vld [vmem:[%s872_s1 + $0x10] sm:$0xff]  ;;  %v513_v4 = vld [vmem:[%s872_s1 + $0x8] sm:$0xff]  ;;  %v512_v5 = vld [vmem:[%s872_s1] sm:$0xff]  ;;  %v713_v16 = vmov 0.0   ;;  %vm124_vm1 = vcmask 523264   ;;  %vm153_vm2 = vcmask 261120  }
  0x12   :  { %86 = vperm.xlu0 %540, %v82_v1   ;;  %v144_v6 = vld [vmem:[#allocation2] sm:$0xff]  ;;  %v519_v7 = vld [vmem:[#allocation7 + $0x18] sm:$0xff]  ;;  %v518_v9 = vld [vmem:[#allocation7 + $0x10] sm:$0xff]  ;;  %v84_v14 = vand.u32 127, %v83_v13  ;;  %s715_s29 = smov [#allocation9]   ;;  %s427_s11 = sshll.u32 %s881_s10, 4  ;;  %s428_s11 = int_to_ptr.hbm [resolvable:$true] %s427_s11 }
  0x13   :  { %v147_v8 = vpack.c.bf16 %v144_v6, %v144_v6  ;;  %199 = vmatpush.bf16.msra.mxu1 %v519_v7  ;;  %v517_v12 = vld [vmem:[#allocation7 + $0x8] sm:$0xff]  ;;  %v516_v19 = vld [vmem:[#allocation7] sm:$0xff]  ;;  %v145_v36 = vld [vmem:[#allocation5] sm:$0xff]  ;;  %s412_s4 = sshll.u32 %s715_s29, 4  ;;  %s716_s12 = smov [#allocation11]   ;;  %s413_s4 = int_to_ptr.vmem [resolvable:$true] %s412_s4 }
  0x14   :  { %v541_v25 = vld [vmem:[%s876_s5] ss:$0 sm:$0xff]  ;;  %vm141_vm3 = vcmp.ge.s32.totalorder %v84_v14, 64  ;;  %vm142_vm4 = vcmp.lt.s32.totalorder %v84_v14, 96  ;;  %v246_v44 = vld [vmem:[#allocation2 + $0x8] sm:$0xff]  ;;  %v523_v48 = vld [vmem:[#allocation7 + $0x38] sm:$0xff] }
  0x15   :  { %133 = vmatpush.bf16.msra.mxu0 %v514_v3  ;;  %v149_v10 = vunpack.c.l.b16 %v147_v8  ;;  %vm812_vm5 = vmand %vm141_vm3, %vm142_vm4  ;;  %v250_v45 = vpack.c.bf16 %v246_v44, %v246_v44  ;;  %308 = vmatpush.bf16.msra.mxu2 %v523_v48  ;;  %v522_v49 = vld [vmem:[#allocation7 + $0x30] sm:$0xff]  ;;  %v521_v50 = vld [vmem:[#allocation7 + $0x28] sm:$0xff]  ;;  %s425_s13 = sshll.u32 %s716_s12, 4  ;;  %s717_s15 = smov [#allocation8]   ;;  %s426_s13 = int_to_ptr.vmem [resolvable:$true] %s425_s13 }
  0x16   :  { %v520_v51 = vld [vmem:[#allocation7 + $0x20] sm:$0xff]  ;;  %v248_v57 = vld [vmem:[#allocation5 + $0x8] sm:$0xff]  ;;  %s402_s16 = sshll.u32 %s717_s15, 4  ;;  %s403_s16 = int_to_ptr.vmem [resolvable:$true] %s402_s16 }
  0x17   :  { %v150_v11 = vpack.c.b16 %v149_v10, %v149_v10  ;;  %200 = vmatpush.bf16.msra.mxu1 %v518_v9  ;;  %v257_v46 = vunpack.c.l.b16 %v250_v45  ;;  %v542_v61 = vld [vmem:[%s876_s5 + $0x1] ss:$0 sm:$0xff]  ;;  %s714_s5 = smov 96  }
  0x19   :  { %134 = vmatpush.bf16.msra.mxu0 %v513_v4  ;;  %v258_v47 = vpack.c.b16 %v257_v46, %v257_v46  ;;  %309 = vmatpush.bf16.msra.mxu2 %v522_v49 }
  0x1a   :  { %151 = vrot.lane.b32.xlu0 %v150_v11, %s712_s0 }
  0x1b   :  { %201 = vmatpush.bf16.msra.mxu1 %v517_v12 }
  0x1d   :  { %135 = vmatpush.bf16.msra.mxu0 %v512_v5  ;;  %310 = vmatpush.bf16.msra.mxu2 %v521_v50 }
  0x1f   :  { %202 = vmatpush.bf16.msra.mxu1 %v516_v19  ;;  %v525_v19 = vld [vmem:[%s877_s6 + $0x8] sm:$0xff] }
  0x20   :  { %389 = vmatpush.bf16.msra.mxu3 %v525_v19 }
  0x21   :  { %311 = vmatpush.bf16.msra.mxu2 %v520_v51 }
  0x84   :  { %v87_v15 = vpop.permute.xlu0 %86 }
  0x85   :  { %vm88_vm0 = vcmp.eq.s32.totalorder %v84_v14, %v87_v15 }
  0x86   :  { %v450_v17 = vsel %vm88_vm0, 1.0, %v713_v16 }
  0x87   :  { %v91_v18 = vpack.c.bf16 %v450_v17, %v450_v17 }
  0x89   :  { %467 = vmatmul.msk.bf16.vlgmr.msra.gmra.mxu0 %vm124_vm1, %v91_v18 }
  0x8c   :  { %v152_v21 = vpop.permute.xlu0 %151 }
 0x106   :  { %v137_v20 = vpop.f32.mrf.mxu0 }
 0x107   :  { %v146_v22 = vpack.c.bf16 %v137_v20, %v137_v20  ;;  %v524_v20 = vld [vmem:[%s877_s6] sm:$0xff] }
 0x108   :  { %390 = vmatpush.bf16.msra.mxu3 %v524_v20 }
 0x109   :  { %v156_v23 = vsel %vm153_vm2, %v146_v22, %v152_v21 }
 0x10a   :  { %484 = vmatmul.msk.bf16.vlgmr.msra.gmra.mxu1 %vm124_vm1, %v156_v23 }
 0x10e   :  { %v139_v24 = vpop.f32.mrf.mxu0 }
 0x10f   :  { %v543_v24 = vld [vmem:[%s878_s7] ss:$0 sm:$0xff] }
 0x187   :  { %v204_v26 = vpop.f32.mrf.mxu1 }
 0x188   :  { %v205_v27 = vadd.f32 %v541_v25, %v204_v26 }
 0x18a   :  { %v208_v29 = vmul.f32 0.5, %v205_v27 }
 0x18c   :  { %v209_v30 = vsel %vm812_vm5, %v205_v27, %v208_v29 }
 0x18d   :  { %544 = vtanh.f32 %v209_v30 }
 0x18f   :  { %v206_v31 = vpop.f32.mrf.mxu1 }
 0x193   :  { %v545_v32 = vpop.eup %544 }
 0x194   :  { %v211_v33 = vmul.f32 0.5, %v545_v32 }
 0x196   :  { %v212_v34 = vadd.f32 0.5, %v211_v33 }
 0x198   :  { %v213_v35 = vsel %vm812_vm5, %v545_v32, %v212_v34 }
 0x199   :  { %220 = vrot.lane.b32.xlu1 %v213_v35, %s709_s28 }
 0x1a1   :  { %215 = vrot.lane.b32.xlu1 %v145_v36, %s712_s0 }
 0x1a9   :  { %259 = vrot.lane.b32.xlu1 %v258_v47, %s712_s0 }
 0x20b   :  { %v221_v37 = vpop.permute.xlu1 %220 }
 0x20c   :  { %v223_v38 = vmul.f32 %v221_v37, %v213_v35 }
 0x20e   :  { %225 = vrot.lane.b32.xlu2 %v223_v38, %s712_s0 }
 0x213   :  { %v216_v39 = vpop.permute.xlu1 %215 }
 0x214   :  { %v218_v40 = vmul.f32 %v216_v39, %v213_v35 }
 0x21b   :  { %v260_v58 = vpop.permute.xlu1 %259 }
 0x268   :  { %v226_v41 = vpop.permute.xlu2 %225 }
 0x269   :  { %v228_v42 = vadd.f32 %v226_v41, %v218_v40 }
 0x26b   :  { %546 = vtanh.f32 %v228_v42 }
 0x271   :  { %v547_v43 = vpop.eup %546 }
 0x272   :  { %231 = vrot.lane.b32.xlu2 %v547_v43, %s709_s28 }
 0x2cc   :  { %v232_v52 = vpop.permute.xlu2 %231 }
 0x2cd   :  { %v234_v53 = vmul.f32 %v232_v52, %v213_v35 }
 0x2cf   :  { %v249_v54 = vpack.c.bf16 %v234_v53, %v234_v53 }
 0x2d1   :  { %v252_v55 = vunpack.c.l.b16 %v249_v54 }
 0x2d3   :  { %v253_v56 = vpack.c.b16 %v252_v55, %v252_v55 }
 0x2d5   :  { %254 = vrot.lane.b32.xlu0 %v253_v56, %s712_s0 }
 0x2dd   :  { %324 = vrot.lane.b32.xlu0 %v248_v57, %s712_s0 }
 0x347   :  { %v255_v59 = vpop.permute.xlu0 %254 }
 0x348   :  { %v263_v60 = vsel %vm153_vm2, %v255_v59, %v260_v58 }
 0x349   :  { %502 = vmatmul.msk.bf16.vlgmr.msra.gmra.mxu2 %vm124_vm1, %v263_v60 }
 0x34f   :  { %v325_v9 = vpop.permute.xlu0 %324 }
 0x3cc   :  { %v313_v62 = vpop.f32.mrf.mxu2 }
 0x3cd   :  { %v314_v63 = vadd.f32 %v542_v61, %v313_v62 }
 0x3cf   :  { %v317_v0 = vmul.f32 0.5, %v314_v63 }
 0x3d1   :  { %v318_v1 = vsel %vm812_vm5, %v314_v63, %v317_v0 }
 0x3d2   :  { %548 = vtanh.f32 %v318_v1 }
 0x3d4   :  { %v315_v2 = vpop.f32.mrf.mxu2 }
 0x3d8   :  { %v549_v3 = vpop.eup %548 }
 0x3d9   :  { %v320_v4 = vmul.f32 0.5, %v549_v3 }
 0x3db   :  { %v321_v5 = vadd.f32 0.5, %v320_v4 }
 0x3dd   :  { %v322_v6 = vsel %vm812_vm5, %v549_v3, %v321_v5 }
 0x3de   :  { %329 = vrot.lane.b32.xlu2 %v322_v6, %s709_s28  ;;  %v327_v10 = vmul.f32 %v325_v9, %v322_v6 }
 0x438   :  { %v330_v7 = vpop.permute.xlu2 %329 }
 0x439   :  { %v332_v8 = vmul.f32 %v330_v7, %v322_v6 }
 0x43b   :  { %334 = vrot.lane.b32.xlu1 %v332_v8, %s712_s0 }
 0x443   :  { %236 = vrot.lane.b32.xlu1 %v234_v53, %s712_s0 }
 0x4ad   :  { %v335_v11 = vpop.permute.xlu1 %334 }
 0x4ae   :  { %v337_v12 = vadd.f32 %v335_v11, %v327_v10 }
 0x4b0   :  { %550 = vtanh.f32 %v337_v12  ;;  %351 = vrot.lane.b32.xlu1 %v337_v12, %s714_s5 }
 0x4b5   :  { %v237_v13 = vpop.permute.xlu1 %236 }
 0x4b6   :  { %v551_v14 = vpop.eup %550  ;;  %239 = vst.msk [vmem:[#allocation9] sm:$0xff] %vm153_vm2, %v237_v13 }
 0x4b7   :  { %340 = vrot.lane.b32.xlu2 %v551_v14, %s709_s28  ;;  %s414_s28 = sshll.u32 %s880_s9, 4  ;;  %s415_s28 = int_to_ptr.hbm [resolvable:$true] %s414_s28 }
 0x511   :  { %v341_v15 = vpop.permute.xlu2 %340 }
 0x512   :  { %v343_v16 = vmul.f32 %v341_v15, %v322_v6 }
 0x514   :  { %v356_v17 = vpack.c.bf16 %v343_v16, %v343_v16  ;;  %345 = vrot.lane.b32.xlu2 %v343_v16, %s712_s0 }
 0x516   :  { %366 = vrot.lane.b32.xlu0 %v356_v17, %s712_s0  ;;  %s404_s0 = sshll.u32 %s879_s8, 4  ;;  %s405_s0 = int_to_ptr.hbm [resolvable:$true] %s404_s0 }
 0x51e   :  { %241 = vrot.lane.b32.xlu0 %v228_v42, %s714_s5 }
 0x522   :  { %v352_v18 = vpop.permute.xlu1 %351 }
 0x523   :  { %355 = vst.msk [vmem:[#allocation11 + $0x8] sm:$0xff] %vm153_vm2, %v352_v18 }
 0x56e   :  { %v346_v21 = vpop.permute.xlu2 %345 }
 0x56f   :  { %349 = vst.msk [vmem:[#allocation9 + $0x8] sm:$0xff] %vm153_vm2, %v346_v21 }
 0x570   :  { %420 = dma.vmem_to_hbm [thread:$0]  %s413_s4, 256, %s415_s28, [#allocation10], %s705_s21, %s705_s21, %s706_s22  }
 0x588   :  { %v367_v22 = vpop.permute.xlu0 %366 }
 0x589   :  { %511 = vmatmul.msk.bf16.vlgmr.msra.gmra.mxu3 %vm153_vm2, %v367_v22 }
 0x590   :  { %v242_v23 = vpop.permute.xlu0 %241 }
 0x591   :  { %244 = vst.msk [vmem:[#allocation11] sm:$0xff] %vm153_vm2, %v242_v23 }
 0x592   :  { %433 = dma.vmem_to_hbm [thread:$0]  %s426_s13, 256, %s428_s11, [#allocation10], %s705_s21, %s705_s21, %s706_s22  }
 0x60c   :  { %v392_v25 = vpop.f32.mrf.mxu3 }
 0x60d   :  { %v393_v26 = vadd.f32 %v543_v24, %v392_v25 }
 0x60f   :  { %396 = vst [vmem:[#allocation8] sm:$0xff] %v393_v26 }
 0x610   :  { %407 = dma.vmem_to_hbm [thread:$0]  %s403_s16, 128, %s405_s0, [#allocation4]  }
 0x614   :  { %v394_v27 = vpop.f32.mrf.mxu3 }
 0x615   :  { %700 = dma.done.wait [#allocation4], 128  }
 0x616   :  { %701 = vsyncadd [#allocation4], 4294967168 }
 0x617   :  { %702 = dma.done.wait [#allocation10], 512  }
 0x618   :  { %703 = vsyncadd [#allocation10], 4294966784 }
 0x619   :  { %446 = vsyncpa [#allocation3], 1 }
 0x61a   :  { %447 = vsyncpa [#allocation6], 1 }
 0x61b   :  { %448 = vsyncpa [#allocation4], 1 }
 0x61c   :  { %449 = vsyncpa [#allocation10], 1 }

</bundles_post_ra>
